<compile_context>
chip_gen: v7x
topology: tpu7x:2x2x1
jax: 0.10.0
libtpu: 0.0.40
codegen_flags: <defaults>
</compile_context>

<pallas_src>
import functools

import numpy as np
import jax
import jax.numpy as jnp
from jax.experimental import pallas as pl
from jax.experimental.pallas import tpu as pltpu

VMEM_SPEC = pl.BlockSpec(memory_space=pltpu.MemorySpace.VMEM)


# ---------------------------------------------------------------------------
# Kernel 1: fused (f1+f2+f3) + 3x3-conv tap partial sums (feeds GAP(conv)).
# ---------------------------------------------------------------------------
def _tap_sums_kernel(f1_ref, f2_ref, f3_ref, m_ref, s_ref):
    f = f1_ref[...] + f2_ref[...] + f3_ref[...]            # (1, C, TL)
    # (C, TL) @ (TL, 9) -> per-channel partial sums for the 9 conv taps.
    part = jnp.dot(f[0], m_ref[...], preferred_element_type=jnp.float32)

    @pl.when(pl.program_id(1) == 0)
    def _():
        s_ref[...] = jnp.zeros_like(s_ref)

    s_ref[...] += part[None]                               # (1, C, 9)


# ---------------------------------------------------------------------------
# Kernel 2: head — GAP matmul + 1x1 compress + 1x1 expand + 3-way softmax.
# Emits (B, 2, C): row 0 = a, row 1 = b + c.
# ---------------------------------------------------------------------------
def _head_kernel(s_ref, wconv_ref, bconv_ref, wcomp_ref, bcomp_ref,
                 wexp_ref, bexp_ref, w_ref, *, inv_hw, C):
    g = jnp.dot(s_ref[...] * inv_hw, wconv_ref[...],
                preferred_element_type=jnp.float32) + bconv_ref[...]     # (B,128)
    comp = jnp.dot(g, wcomp_ref[...],
                   preferred_element_type=jnp.float32) + bcomp_ref[...]  # (B,64)
    e = jnp.dot(comp, wexp_ref[...],
                preferred_element_type=jnp.float32) + bexp_ref[...]      # (B,3C)
    # Expand-weight columns are de-interleaved (k-major): the three logits
    # for every channel are three contiguous lane slices.
    l0 = e[:, 0:C]
    l1 = e[:, C:2 * C]
    l2 = e[:, 2 * C:3 * C]
    m = jnp.maximum(jnp.maximum(l0, l1), l2)
    e0 = jnp.exp(l0 - m)
    e1 = jnp.exp(l1 - m)
    e2 = jnp.exp(l2 - m)
    inv = 1.0 / (e0 + e1 + e2)
    w_ref[...] = jnp.stack([e0 * inv, (e1 + e2) * inv], axis=1)   # (B, 2, C)


# ---------------------------------------------------------------------------
# Kernel 3: weighted sum   out = f1*a + f2*(b+c)   (f2 twice per the spec,
# folded into one multiply).
# ---------------------------------------------------------------------------
def _weighted_sum_kernel(f1_ref, f2_ref, w_ref, o_ref):
    w = w_ref[...]                                         # (1, 2, C)
    a = w[0, 0, :][None, :, None]                          # (1, C, 1)
    bc = w[0, 1, :][None, :, None]
    o_ref[...] = f1_ref[...] * a + f2_ref[...] * bc


# ---------------------------------------------------------------------------
# Glue / parameters
# ---------------------------------------------------------------------------
def _pick_lane_tile(hw):
    for t in (2048, 1024, 512, 256, 128):
        if hw % t == 0 and hw >= t:
            return t
    return hw


def _tap_mask_matrix(H, W):
    """(H*W, 9) 0/1 matrix: column t = dy*3+dx selects the input sub-rectangle
    touched by a 3x3 'same'-padded conv tap (dy, dx)."""
    m = np.zeros((H * W, 9), dtype=np.float32)
    for dy in range(3):
        y0, y1 = max(0, dy - 1), min(H, H - 1 + dy)
        for dx in range(3):
            x0, x1 = max(0, dx - 1), min(W, W - 1 + dx)
            blk = np.zeros((H, W), dtype=np.float32)
            blk[y0:y1, x0:x1] = 1.0
            m[:, dy * 3 + dx] = blk.reshape(-1)
    return jnp.asarray(m)


def init_params(key, C):
    """PyTorch-layout parameters of FeatureMultiscale (only the ones used)."""
    def nrm(k, shape, scale=0.05):
        return scale * jax.random.normal(k, shape, dtype=jnp.float32)

    ks = jax.random.split(key, 10)
    return {
        "w1": nrm(ks[0], (128, C, 3, 3)), "b1": nrm(ks[1], (128,)),
        "w2": nrm(ks[2], (128, C, 3, 3)), "b2": nrm(ks[3], (128,)),
        "w3": nrm(ks[4], (128, C, 3, 3)), "b3": nrm(ks[5], (128,)),
        "wc": nrm(ks[6], (64, 128, 1, 1)), "bc": nrm(ks[7], (64,)),
        "we": nrm(ks[8], (3 * C, 64, 1, 1)), "be": nrm(ks[9], (3 * C,)),
    }


def to_kernel_params(pt, C):
    """Convert PyTorch-layout params into the matmul layouts the kernels use."""
    w_sum = pt["w1"] + pt["w2"] + pt["w3"]                     # (128, C, 3, 3)
    b_sum = pt["b1"] + pt["b2"] + pt["b3"]                     # (128,)
    # rows ordered (channel-major, tap-minor): index = c*9 + (dy*3+dx)
    w_conv = jnp.transpose(w_sum, (1, 2, 3, 0)).reshape(C * 9, 128)
    w_comp = jnp.transpose(pt["wc"][:, :, 0, 0])               # (128, 64)
    # De-interleave channel_expand: new column j = k*C + c <- old out-chan 3c+k
    perm = np.array([3 * c + k for k in range(3) for c in range(C)],
                    dtype=np.int32)
    we2d = pt["we"][:, :, 0, 0]                                # (3C, 64)
    w_exp = jnp.transpose(we2d[perm, :])                       # (64, 3C)
    b_exp = pt["be"][perm][None, :]                            # (1, 3C)
    return {
        "w_conv": w_conv, "b_conv": b_sum[None, :],
        "w_comp": w_comp, "b_comp": pt["bc"][None, :],
        "w_exp": w_exp, "b_exp": b_exp,
    }


# ---------------------------------------------------------------------------
# Forward pass (mirrors FeatureMultiscale.forward)
# ---------------------------------------------------------------------------
def feature_multiscale_forward(kparams, feature1, feature2, feature3):
    B, C, H, W = feature1.shape
    HW = H * W
    TL = _pick_lane_tile(HW)

    f1r = feature1.reshape(B, C, HW).astype(jnp.float32)
    f2r = feature2.reshape(B, C, HW).astype(jnp.float32)
    f3r = feature3.reshape(B, C, HW).astype(jnp.float32)
    mask = _tap_mask_matrix(H, W)                              # (HW, 9)

    # --- Kernel 1: sum features + conv-tap partial sums (reduction grid) ----
    taps = pl.pallas_call(
        _tap_sums_kernel,
        out_shape=jax.ShapeDtypeStruct((B, C, 9), jnp.float32),
        grid=(B, HW // TL),
        in_specs=[
            pl.BlockSpec((1, C, TL), lambda b, l: (b, 0, l)),
            pl.BlockSpec((1, C, TL), lambda b, l: (b, 0, l)),
            pl.BlockSpec((1, C, TL), lambda b, l: (b, 0, l)),
            pl.BlockSpec((TL, 9), lambda b, l: (l, 0)),
        ],
        out_specs=pl.BlockSpec((1, C, 9), lambda b, l: (b, 0, 0)),
        compiler_params=pltpu.CompilerParams(
            dimension_semantics=("parallel", "arbitrary")),
    )(f1r, f2r, f3r, mask)

    s_flat = taps.reshape(B, C * 9)

    # --- Kernel 2: fused GAP + 1x1 convs + softmax over the 3 scales --------
    weights = pl.pallas_call(
        functools.partial(_head_kernel, inv_hw=1.0 / float(HW), C=C),
        out_shape=jax.ShapeDtypeStruct((B, 2, C), jnp.float32),
        in_specs=[VMEM_SPEC] * 7,
        out_specs=VMEM_SPEC,
    )(s_flat, kparams["w_conv"], kparams["b_conv"], kparams["w_comp"],
      kparams["b_comp"], kparams["w_exp"], kparams["b_exp"])

    # --- Kernel 3: weighted combination (lane-dense spatial, parallel grid) -
    out = pl.pallas_call(
        _weighted_sum_kernel,
        out_shape=jax.ShapeDtypeStruct((B, C, HW), jnp.float32),
        grid=(B, HW // TL),
        in_specs=[
            pl.BlockSpec((1, C, TL), lambda b, l: (b, 0, l)),
            pl.BlockSpec((1, C, TL), lambda b, l: (b, 0, l)),
            pl.BlockSpec((1, 2, C), lambda b, l: (b, 0, 0)),
        ],
        out_specs=pl.BlockSpec((1, C, TL), lambda b, l: (b, 0, l)),
        compiler_params=pltpu.CompilerParams(
            dimension_semantics=("parallel", "parallel")),
    )(f1r, f2r, weights)

    return out.reshape(B, C, H, W)


# ---------------------------------------------------------------------------
# Pure-JAX reference (mirrors the PyTorch module op-for-op)
# ---------------------------------------------------------------------------
def reference_forward(pt, f1, f2, f3):
    hp = jax.lax.Precision.HIGHEST
    B, C, H, W = f1.shape
    f = f1 + f2 + f3

    def conv3(x, w, b):
        y = jax.lax.conv_general_dilated(
            x, w, window_strides=(1, 1), padding=((1, 1), (1, 1)),
            dimension_numbers=("NCHW", "OIHW", "NCHW"), precision=hp)
        return y + b[None, :, None, None]

    y = (conv3(f, pt["w1"], pt["b1"]) + conv3(f, pt["w2"], pt["b2"])
         + conv3(f, pt["w3"], pt["b3"]))
    g = jnp.mean(y, axis=(2, 3))                                    # (B, 128)
    comp = jnp.dot(g, pt["wc"][:, :, 0, 0].T, precision=hp) + pt["bc"]
    e = jnp.dot(comp, pt["we"][:, :, 0, 0].T, precision=hp) + pt["be"]
    wgt = jax.nn.softmax(e.reshape(B, C, 3), axis=2)
    a = wgt[:, :, 0][:, :, None, None]
    b = wgt[:, :, 1][:, :, None, None]
    c = wgt[:, :, 2][:, :, None, None]
    return f1 * a + f2 * b + f2 * c


if __name__ == "__main__":
    key = jax.random.PRNGKey(0)
    kp, k1, k2, k3 = jax.random.split(key, 4)

    B, C, H, W = 2, 32, 16, 16          # batch=2, input_channels=32, 16x16
    pt_params = init_params(kp, C)
    kparams = to_kernel_params(pt_params, C)

    feature1 = jax.random.normal(k1, (B, C, H, W), dtype=jnp.float32)
    feature2 = jax.random.normal(k2, (B, C, H, W), dtype=jnp.float32)
    feature3 = jax.random.normal(k3, (B, C, H, W), dtype=jnp.float32)

    fwd = jax.jit(feature_multiscale_forward)
    out = fwd(kparams, feature1, feature2, feature3)
    jax.block_until_ready(out)
    assert out.shape == (B, C, H, W)

    ref = reference_forward(pt_params, feature1, feature2, feature3)
    max_err = float(jnp.max(jnp.abs(out - ref)))
    assert max_err < 1e-3, f"mismatch vs reference: max abs err {max_err}"

    print("KERNEL_OK")
</pallas_src>

<mosaic_0001>
module attributes {stable_mosaic.version = 11 : i64} {
  func.func @_tap_sums_kernel(%arg0: i32, %arg1: i32, %arg2: memref<1x32x256xf32, #tpu.memory_space<vmem>>, %arg3: memref<1x32x256xf32, #tpu.memory_space<vmem>>, %arg4: memref<1x32x256xf32, #tpu.memory_space<vmem>>, %arg5: memref<256x9xf32, #tpu.memory_space<vmem>>, %arg6: memref<1x32x9xf32, #tpu.memory_space<vmem>>) attributes {dimension_semantics = [#tpu.dimension_semantics<parallel>, #tpu.dimension_semantics<arbitrary>], iteration_bounds = array<i64: 2, 1>, scalar_prefetch = 0 : i64, scratch_operands = 0 : i64, tpu.core_type = #tpu.core_type<tc>, window_params = [{transform_indices = @transform_0, window_bounds = array<i64: 1, 32, 256>}, {transform_indices = @transform_1, window_bounds = array<i64: 1, 32, 256>}, {transform_indices = @transform_2, window_bounds = array<i64: 1, 32, 256>}, {transform_indices = @transform_3, window_bounds = array<i64: 256, 9>}, {transform_indices = @transform_4, window_bounds = array<i64: 1, 32, 9>}]} {
    %c0 = arith.constant 0 : index
    %c0_0 = arith.constant 0 : index
    %c0_1 = arith.constant 0 : index
    %0 = vector.load %arg2[%c0, %c0_0, %c0_1] : memref<1x32x256xf32, #tpu.memory_space<vmem>>, vector<1x32x256xf32>
    %c0_2 = arith.constant 0 : index
    %c0_3 = arith.constant 0 : index
    %c0_4 = arith.constant 0 : index
    %1 = vector.load %arg3[%c0_2, %c0_3, %c0_4] : memref<1x32x256xf32, #tpu.memory_space<vmem>>, vector<1x32x256xf32>
    %2 = arith.addf %0, %1 : vector<1x32x256xf32>
    %c0_5 = arith.constant 0 : index
    %c0_6 = arith.constant 0 : index
    %c0_7 = arith.constant 0 : index
    %3 = vector.load %arg4[%c0_5, %c0_6, %c0_7] : memref<1x32x256xf32, #tpu.memory_space<vmem>>, vector<1x32x256xf32>
    %4 = arith.addf %2, %3 : vector<1x32x256xf32>
    %5 = vector.shape_cast %4 : vector<1x32x256xf32> to vector<32x256xf32>
    %c0_8 = arith.constant 0 : index
    %c0_9 = arith.constant 0 : index
    %6 = vector.load %arg5[%c0_8, %c0_9] : memref<256x9xf32, #tpu.memory_space<vmem>>, vector<256x9xf32>
    %cst = arith.constant dense<0.000000e+00> : vector<32x9xf32>
    %7 = tpu.matmul %5, %6, %cst {dimension_numbers = #tpu.dot_dimension_numbers<[1], [0], [0], [1], [0, 0, 1, 1], [], []>} : vector<32x256xf32>, vector<256x9xf32>, vector<32x9xf32> -> vector<32x9xf32>
    %c0_i32 = arith.constant 0 : i32
    %8 = arith.cmpi eq, %arg1, %c0_i32 : i32
    %9 = arith.extui %8 : i1 to i32
    %c0_i32_10 = arith.constant 0 : i32
    %10 = arith.cmpi ne, %9, %c0_i32_10 : i32
    scf.if %10 {
      %cst_17 = arith.constant 0.000000e+00 : f32
      %15 = vector.broadcast %cst_17 : f32 to vector<1x32x9xf32>
      %c0_18 = arith.constant 0 : index
      %c0_19 = arith.constant 0 : index
      %c0_20 = arith.constant 0 : index
      %16 = vector.load %arg6[%c0_18, %c0_19, %c0_20] : memref<1x32x9xf32, #tpu.memory_space<vmem>>, vector<1x32x9xf32>
      tpu.vector_store %arg6[%c0_18, %c0_19, %c0_20], %15 {strides = array<i32>} : memref<1x32x9xf32, #tpu.memory_space<vmem>>, vector<1x32x9xf32>,
    } else {
    }
    %c0_11 = arith.constant 0 : index
    %c0_12 = arith.constant 0 : index
    %c0_13 = arith.constant 0 : index
    %11 = vector.load %arg6[%c0_11, %c0_12, %c0_13] : memref<1x32x9xf32, #tpu.memory_space<vmem>>, vector<1x32x9xf32>
    %12 = vector.shape_cast %7 : vector<32x9xf32> to vector<1x32x9xf32>
    %13 = arith.addf %11, %12 : vector<1x32x9xf32>
    %c0_14 = arith.constant 0 : index
    %c0_15 = arith.constant 0 : index
    %c0_16 = arith.constant 0 : index
    %14 = vector.load %arg6[%c0_14, %c0_15, %c0_16] : memref<1x32x9xf32, #tpu.memory_space<vmem>>, vector<1x32x9xf32>
    tpu.vector_store %arg6[%c0_14, %c0_15, %c0_16], %13 {strides = array<i32>} : memref<1x32x9xf32, #tpu.memory_space<vmem>>, vector<1x32x9xf32>,
    return
  }
  func.func @transform_0(%arg0: i32, %arg1: i32) -> (i32, i32, i32) {
    %c0_i32 = arith.constant 0 : i32
    %c0_i32_0 = arith.constant 0 : i32
    return %arg0, %c0_i32, %arg1 : i32, i32, i32
  }
  func.func @transform_1(%arg0: i32, %arg1: i32) -> (i32, i32, i32) {
    %c0_i32 = arith.constant 0 : i32
    %c0_i32_0 = arith.constant 0 : i32
    return %arg0, %c0_i32, %arg1 : i32, i32, i32
  }
  func.func @transform_2(%arg0: i32, %arg1: i32) -> (i32, i32, i32) {
    %c0_i32 = arith.constant 0 : i32
    %c0_i32_0 = arith.constant 0 : i32
    return %arg0, %c0_i32, %arg1 : i32, i32, i32
  }
  func.func @transform_3(%arg0: i32, %arg1: i32) -> (i32, i32) {
    %c0_i32 = arith.constant 0 : i32
    %c0_i32_0 = arith.constant 0 : i32
    return %arg1, %c0_i32 : i32, i32
  }
  func.func @transform_4(%arg0: i32, %arg1: i32) -> (i32, i32, i32) {
    %c0_i32 = arith.constant 0 : i32
    %c0_i32_0 = arith.constant 0 : i32
    %c0_i32_1 = arith.constant 0 : i32
    return %arg0, %c0_i32, %c0_i32_0 : i32, i32, i32
  }
}

module attributes {stable_mosaic.version = 11 : i64} {
  func.func @_weighted_sum_kernel(%arg0: i32, %arg1: i32, %arg2: memref<1x32x256xf32, #tpu.memory_space<vmem>>, %arg3: memref<1x32x256xf32, #tpu.memory_space<vmem>>, %arg4: memref<1x2x32xf32, #tpu.memory_space<vmem>>, %arg5: memref<1x32x256xf32, #tpu.memory_space<vmem>>) attributes {dimension_semantics = [#tpu.dimension_semantics<parallel>, #tpu.dimension_semantics<parallel>], iteration_bounds = array<i64: 2, 1>, scalar_prefetch = 0 : i64, scratch_operands = 0 : i64, tpu.core_type = #tpu.core_type<tc>, window_params = [{transform_indices = @transform_0, window_bounds = array<i64: 1, 32, 256>}, {transform_indices = @transform_1, window_bounds = array<i64: 1, 32, 256>}, {transform_indices = @transform_2, window_bounds = array<i64: 1, 2, 32>}, {transform_indices = @transform_3, window_bounds = array<i64: 1, 32, 256>}]} {
    %c0 = arith.constant 0 : index
    %c0_0 = arith.constant 0 : index
    %c0_1 = arith.constant 0 : index
    %0 = vector.load %arg4[%c0, %c0_0, %c0_1] : memref<1x2x32xf32, #tpu.memory_space<vmem>>, vector<1x2x32xf32>
    %1 = vector.extract_strided_slice %0 {offsets = [0, 0, 0], sizes = [1, 1, 32], strides = [1, 1, 1]} : vector<1x2x32xf32> to vector<1x1x32xf32>
    %2 = vector.shape_cast %1 : vector<1x1x32xf32> to vector<32xf32>
    %3 = vector.shape_cast %2 : vector<32xf32> to vector<1x32x1xf32>
    %4 = vector.extract_strided_slice %0 {offsets = [0, 1, 0], sizes = [1, 1, 32], strides = [1, 1, 1]} : vector<1x2x32xf32> to vector<1x1x32xf32>
    %5 = vector.shape_cast %4 : vector<1x1x32xf32> to vector<32xf32>
    %6 = vector.shape_cast %5 : vector<32xf32> to vector<1x32x1xf32>
    %c0_2 = arith.constant 0 : index
    %c0_3 = arith.constant 0 : index
    %c0_4 = arith.constant 0 : index
    %7 = vector.load %arg2[%c0_2, %c0_3, %c0_4] : memref<1x32x256xf32, #tpu.memory_space<vmem>>, vector<1x32x256xf32>
    %8 = vector.broadcast %3 : vector<1x32x1xf32> to vector<1x32x256xf32>
    %9 = arith.mulf %7, %8 : vector<1x32x256xf32>
    %c0_5 = arith.constant 0 : index
    %c0_6 = arith.constant 0 : index
    %c0_7 = arith.constant 0 : index
    %10 = vector.load %arg3[%c0_5, %c0_6, %c0_7] : memref<1x32x256xf32, #tpu.memory_space<vmem>>, vector<1x32x256xf32>
    %11 = vector.broadcast %6 : vector<1x32x1xf32> to vector<1x32x256xf32>
    %12 = arith.mulf %10, %11 : vector<1x32x256xf32>
    %13 = arith.addf %9, %12 : vector<1x32x256xf32>
    %c0_8 = arith.constant 0 : index
    %c0_9 = arith.constant 0 : index
    %c0_10 = arith.constant 0 : index
    %14 = vector.load %arg5[%c0_8, %c0_9, %c0_10] : memref<1x32x256xf32, #tpu.memory_space<vmem>>, vector<1x32x256xf32>
    tpu.vector_store %arg5[%c0_8, %c0_9, %c0_10], %13 {strides = array<i32>} : memref<1x32x256xf32, #tpu.memory_space<vmem>>, vector<1x32x256xf32>,
    return
  }
  func.func @transform_0(%arg0: i32, %arg1: i32) -> (i32, i32, i32) {
    %c0_i32 = arith.constant 0 : i32
    %c0_i32_0 = arith.constant 0 : i32
    return %arg0, %c0_i32, %arg1 : i32, i32, i32
  }
  func.func @transform_1(%arg0: i32, %arg1: i32) -> (i32, i32, i32) {
    %c0_i32 = arith.constant 0 : i32
    %c0_i32_0 = arith.constant 0 : i32
    return %arg0, %c0_i32, %arg1 : i32, i32, i32
  }
  func.func @transform_2(%arg0: i32, %arg1: i32) -> (i32, i32, i32) {
    %c0_i32 = arith.constant 0 : i32
    %c0_i32_0 = arith.constant 0 : i32
    %c0_i32_1 = arith.constant 0 : i32
    return %arg0, %c0_i32, %c0_i32_0 : i32, i32, i32
  }
  func.func @transform_3(%arg0: i32, %arg1: i32) -> (i32, i32, i32) {
    %c0_i32 = arith.constant 0 : i32
    %c0_i32_0 = arith.constant 0 : i32
    return %arg0, %c0_i32, %arg1 : i32, i32, i32
  }
}

module attributes {stable_mosaic.version = 11 : i64} {
  func.func @_head_kernel(%arg0: memref<2x288xf32, #tpu.memory_space<vmem>>, %arg1: memref<288x128xf32, #tpu.memory_space<vmem>>, %arg2: memref<1x128xf32, #tpu.memory_space<vmem>>, %arg3: memref<128x64xf32, #tpu.memory_space<vmem>>, %arg4: memref<1x64xf32, #tpu.memory_space<vmem>>, %arg5: memref<64x96xf32, #tpu.memory_space<vmem>>, %arg6: memref<1x96xf32, #tpu.memory_space<vmem>>, %arg7: memref<2x2x32xf32, #tpu.memory_space<vmem>>) attributes {dimension_semantics = [], scalar_prefetch = 0 : i64, scratch_operands = 0 : i64, tpu.core_type = #tpu.core_type<tc>} {
    %c0 = arith.constant 0 : index
    %c0_0 = arith.constant 0 : index
    %0 = vector.load %arg0[%c0, %c0_0] : memref<2x288xf32, #tpu.memory_space<vmem>>, vector<2x288xf32>
    %cst = arith.constant 3.906250e-03 : f32
    %1 = vector.broadcast %cst : f32 to vector<2x288xf32>
    %2 = arith.mulf %0, %1 : vector<2x288xf32>
    %c0_1 = arith.constant 0 : index
    %c0_2 = arith.constant 0 : index
    %3 = vector.load %arg1[%c0_1, %c0_2] : memref<288x128xf32, #tpu.memory_space<vmem>>, vector<288x128xf32>
    %cst_3 = arith.constant dense<0.000000e+00> : vector<2x128xf32>
    %4 = tpu.matmul %2, %3, %cst_3 {dimension_numbers = #tpu.dot_dimension_numbers<[1], [0], [0], [1], [0, 0, 1, 1], [], []>} : vector<2x288xf32>, vector<288x128xf32>, vector<2x128xf32> -> vector<2x128xf32>
    %c0_4 = arith.constant 0 : index
    %c0_5 = arith.constant 0 : index
    %5 = vector.load %arg2[%c0_4, %c0_5] : memref<1x128xf32, #tpu.memory_space<vmem>>, vector<1x128xf32>
    %6 = vector.broadcast %5 : vector<1x128xf32> to vector<2x128xf32>
    %7 = arith.addf %4, %6 : vector<2x128xf32>
    %c0_6 = arith.constant 0 : index
    %c0_7 = arith.constant 0 : index
    %8 = vector.load %arg3[%c0_6, %c0_7] : memref<128x64xf32, #tpu.memory_space<vmem>>, vector<128x64xf32>
    %cst_8 = arith.constant dense<0.000000e+00> : vector<2x64xf32>
    %9 = tpu.matmul %7, %8, %cst_8 {dimension_numbers = #tpu.dot_dimension_numbers<[1], [0], [0], [1], [0, 0, 1, 1], [], []>} : vector<2x128xf32>, vector<128x64xf32>, vector<2x64xf32> -> vector<2x64xf32>
    %c0_9 = arith.constant 0 : index
    %c0_10 = arith.constant 0 : index
    %10 = vector.load %arg4[%c0_9, %c0_10] : memref<1x64xf32, #tpu.memory_space<vmem>>, vector<1x64xf32>
    %11 = vector.broadcast %10 : vector<1x64xf32> to vector<2x64xf32>
    %12 = arith.addf %9, %11 : vector<2x64xf32>
    %c0_11 = arith.constant 0 : index
    %c0_12 = arith.constant 0 : index
    %13 = vector.load %arg5[%c0_11, %c0_12] : memref<64x96xf32, #tpu.memory_space<vmem>>, vector<64x96xf32>
    %cst_13 = arith.constant dense<0.000000e+00> : vector<2x96xf32>
    %14 = tpu.matmul %12, %13, %cst_13 {dimension_numbers = #tpu.dot_dimension_numbers<[1], [0], [0], [1], [0, 0, 1, 1], [], []>} : vector<2x64xf32>, vector<64x96xf32>, vector<2x96xf32> -> vector<2x96xf32>
    %c0_14 = arith.constant 0 : index
    %c0_15 = arith.constant 0 : index
    %15 = vector.load %arg6[%c0_14, %c0_15] : memref<1x96xf32, #tpu.memory_space<vmem>>, vector<1x96xf32>
    %16 = vector.broadcast %15 : vector<1x96xf32> to vector<2x96xf32>
    %17 = arith.addf %14, %16 : vector<2x96xf32>
    %18 = vector.extract_strided_slice %17 {offsets = [0, 0], sizes = [2, 32], strides = [1, 1]} : vector<2x96xf32> to vector<2x32xf32>
    %19 = vector.extract_strided_slice %17 {offsets = [0, 32], sizes = [2, 32], strides = [1, 1]} : vector<2x96xf32> to vector<2x32xf32>
    %20 = vector.extract_strided_slice %17 {offsets = [0, 64], sizes = [2, 32], strides = [1, 1]} : vector<2x96xf32> to vector<2x32xf32>
    %21 = arith.maximumf %18, %19 : vector<2x32xf32>
    %22 = arith.maximumf %21, %20 : vector<2x32xf32>
    %23 = arith.subf %18, %22 : vector<2x32xf32>
    %24 = math.exp %23 : vector<2x32xf32>
    %25 = arith.subf %19, %22 : vector<2x32xf32>
    %26 = math.exp %25 : vector<2x32xf32>
    %27 = arith.subf %20, %22 : vector<2x32xf32>
    %28 = math.exp %27 : vector<2x32xf32>
    %29 = arith.addf %24, %26 : vector<2x32xf32>
    %30 = arith.addf %29, %28 : vector<2x32xf32>
    %cst_16 = arith.constant 1.000000e+00 : f32
    %31 = vector.broadcast %cst_16 : f32 to vector<2x32xf32>
    %32 = arith.divf %31, %30 : vector<2x32xf32>
    %33 = arith.mulf %24, %32 : vector<2x32xf32>
    %34 = arith.addf %26, %28 : vector<2x32xf32>
    %35 = arith.mulf %34, %32 : vector<2x32xf32>
    %36 = vector.shape_cast %33 : vector<2x32xf32> to vector<2x1x32xf32>
    %37 = vector.shape_cast %35 : vector<2x32xf32> to vector<2x1x32xf32>
    %38 = tpu.concatenate %36, %37 in 1 : vector<2x1x32xf32>, vector<2x1x32xf32> -> vector<2x2x32xf32>
    %c0_17 = arith.constant 0 : index
    %c0_18 = arith.constant 0 : index
    %c0_19 = arith.constant 0 : index
    %39 = vector.load %arg7[%c0_17, %c0_18, %c0_19] : memref<2x2x32xf32, #tpu.memory_space<vmem>>, vector<2x2x32xf32>
    tpu.vector_store %arg7[%c0_17, %c0_18, %c0_19], %38 {strides = array<i32>} : memref<2x2x32xf32, #tpu.memory_space<vmem>>, vector<2x2x32xf32>,
    return
  }
}

</mosaic_0001>

<bundles_post_ra>
// kernel: feature_multiscale_forward.3
= control target key start
LH: loop header
LB: loop body
LE: loop exit
PB: predicated region body
PF: predicated region fallthrough
CT: control target
= control target key end

     0   :  { %s807_s15 = smov 0   ;;  %s809_s16 = smov 0   ;;  %s984_s0 = inlined_call_operand.vmem [shape: f32[2,32,256], index: 0, kind: input, shape index: {}]   ;;  %s985_s1 = inlined_call_operand.vmem [shape: f32[2,32,256], index: 1, kind: input, shape index: {}]   ;;  %s986_s2 = inlined_call_operand.vmem [shape: f32[2,32,256], index: 2, kind: input, shape index: {}]   ;;  %s987_s3 = inlined_call_operand.vmem [shape: f32[256,9], index: 3, kind: input, shape index: {}]   ;;  %s988_s4 = inlined_call_operand.vmem [shape: f32[2,32,9], index: 4, kind: output, shape index: {}]  }
   0x1   :  { %s811_s17 = smov 0  }
   0x2 LB: > { %s26_s18 = sadd.s32 1, %s775_s16  ;;  %p625_p0 = scmp.ge.s32.totalorder %s779_s17, 1  ;;  %s779_s17 = sphi %s811_s17, %s14_s17   ;;  %s775_s16 = sphi %s809_s16, %s990_s16   ;;  %s771_s15 = sphi %s807_s15, %s989_s15  }
   0x3   : > { %p28_p1 = scmp.ge.s32.totalorder %s26_s18, 2  ;;  %p226_p2 = scmp.lt.s32.totalorder %s779_s17, 3 }
   0x5   : > { %s992_s18 = smov (%p28_p1, %s26_s18), 0  ;;  %p227_p3 = pnand %p625_p0, %p226_p2 }
   0x6   : > { %v376_v0 = vld [vmem:[%s987_s3 + $0x80] sm:$0xff] (!%p227_p3)  ;;  %v377_v1 = vld [vmem:[%s987_s3 + $0x88] sm:$0xff] (!%p227_p3)  ;;  %p280_p4 = scmp.lt.s32.totalorder (!%p227_p3), %s771_s15, 1  ;;  %v378_v5 = vld [vmem:[%s987_s3 + $0x90] sm:$0xff] (!%p227_p3)  ;;  %vm481_vm0 = vcmask (!%p227_p3), 72704  }
   0x7   : > { %230 = sbr.rel (%p227_p3) target bundleno = 264 (0x108), region = 36  ;;  %v360_v2 = vld [vmem:[%s987_s3] sm:$0xff] (!%p227_p3)  ;;  %v684_v3 = vpack.c.bf16 (!%p227_p3), %v377_v1, %v376_v0  ;;  %v361_v4 = vld [vmem:[%s987_s3 + $0x8] sm:$0xff] (!%p227_p3)  ;;  %v379_v6 = vld [vmem:[%s987_s3 + $0x98] sm:$0xff] (!%p227_p3) }
   0x8   : > { %v686_v7 = vpack.c.bf16 (!%p227_p3), %v361_v4, %v360_v2  ;;  %v688_v8 = vpack.c.bf16 (!%p227_p3), %v379_v6, %v378_v5  ;;  %v362_v9 = vld [vmem:[%s987_s3 + $0x10] sm:$0xff] (!%p227_p3)  ;;  %v363_v10 = vld [vmem:[%s987_s3 + $0x18] sm:$0xff] (!%p227_p3)  ;;  %v380_v11 = vld [vmem:[%s987_s3 + $0xa0] sm:$0xff] (!%p227_p3) }
   0x9   : > { %685 = vmatprep.subr.bf16.mxu0 (!%p227_p3), %v684_v3  ;;  %716 = vmatprep.subr.bf16.mxu1 (!%p227_p3), %v684_v3  ;;  %v381_v12 = vld [vmem:[%s987_s3 + $0xa8] sm:$0xff] (!%p227_p3)  ;;  %v690_v13 = vpack.c.bf16 (!%p227_p3), %v363_v10, %v362_v9  ;;  %v364_v15 = vld [vmem:[%s987_s3 + $0x20] sm:$0xff] (!%p227_p3)  ;;  %v382_v17 = vld [vmem:[%s987_s3 + $0xb0] sm:$0xff] (!%p227_p3) }
   0xa   : > { %687 = vmatpush3.bf16.msra.mxu0 (!%p227_p3), %v686_v7  ;;  %724 = vmatpush3.bf16.msra.mxu1 (!%p227_p3), %v686_v7  ;;  %v692_v14 = vpack.c.bf16 (!%p227_p3), %v381_v12, %v380_v11  ;;  %v365_v16 = vld [vmem:[%s987_s3 + $0x28] sm:$0xff] (!%p227_p3)  ;;  %v383_v18 = vld [vmem:[%s987_s3 + $0xb8] sm:$0xff] (!%p227_p3)  ;;  %v366_v21 = vld [vmem:[%s987_s3 + $0x30] sm:$0xff] (!%p227_p3) }
   0xb   : > { %689 = vmatprep.subr.bf16.mxu0 (!%p227_p3), %v688_v8  ;;  %717 = vmatprep.subr.bf16.mxu1 (!%p227_p3), %v688_v8  ;;  %v694_v19 = vpack.c.bf16 (!%p227_p3), %v365_v16, %v364_v15  ;;  %v696_v20 = vpack.c.bf16 (!%p227_p3), %v383_v18, %v382_v17  ;;  %v367_v22 = vld [vmem:[%s987_s3 + $0x38] sm:$0xff] (!%p227_p3)  ;;  %v384_v23 = vld [vmem:[%s987_s3 + $0xc0] sm:$0xff] (!%p227_p3)  ;;  %v385_v24 = vld [vmem:[%s987_s3 + $0xc8] sm:$0xff] (!%p227_p3) }
   0xc   : > { %v698_v29 = vpack.c.bf16 (!%p227_p3), %v367_v22, %v366_v21  ;;  %v700_v33 = vpack.c.bf16 (!%p227_p3), %v385_v24, %v384_v23  ;;  %v368_v34 = vld [vmem:[%s987_s3 + $0x40] sm:$0xff] (!%p227_p3)  ;;  %v369_v35 = vld [vmem:[%s987_s3 + $0x48] sm:$0xff] (!%p227_p3)  ;;  %v386_v37 = vld [vmem:[%s987_s3 + $0xd0] sm:$0xff] (!%p227_p3)  ;;  %v781_v24 = vmov (!%p227_p3), 0.0  }
   0xd   : > { %v387_v38 = vld [vmem:[%s987_s3 + $0xd8] sm:$0xff] (!%p227_p3)  ;;  %v702_v41 = vpack.c.bf16 (!%p227_p3), %v369_v35, %v368_v34  ;;  %v370_v43 = vld [vmem:[%s987_s3 + $0x50] sm:$0xff] (!%p227_p3)  ;;  %v388_v45 = vld [vmem:[%s987_s3 + $0xe0] sm:$0xff] (!%p227_p3) }
   0xe   : > { %s994_s15 = smov (!%p280_p4, %s771_s15), 1  ;;  %691 = vmatpush3.bf16.msra.mxu0 %v690_v13  ;;  %725 = vmatpush3.bf16.msra.mxu1 %v690_v13  ;;  %v704_v42 = vpack.c.bf16 %v387_v38, %v386_v37  ;;  %v371_v44 = vld [vmem:[%s987_s3 + $0x58] sm:$0xff]  ;;  %v389_v46 = vld [vmem:[%s987_s3 + $0xe8] sm:$0xff]  ;;  %v372_v49 = vld [vmem:[%s987_s3 + $0x60] sm:$0xff] }
   0xf   : > { %s636_s13 = sshll.u32 %s994_s15, 6  ;;  %693 = vmatprep.subr.bf16.mxu0 %v692_v14  ;;  %718 = vmatprep.subr.bf16.mxu1 %v692_v14  ;;  %v706_v47 = vpack.c.bf16 %v371_v44, %v370_v43  ;;  %v708_v48 = vpack.c.bf16 %v389_v46, %v388_v45  ;;  %v373_v50 = vld [vmem:[%s987_s3 + $0x68] sm:$0xff]  ;;  %v390_v51 = vld [vmem:[%s987_s3 + $0xf0] sm:$0xff]  ;;  %v391_v52 = vld [vmem:[%s987_s3 + $0xf8] sm:$0xff] }
  0x10   : > { %s873_s28 = scalar_lea.vmem %s984_s0, %s636_s13  ;;  %s878_s5 = scalar_lea.vmem %s985_s1, %s636_s13  ;;  %v374_v53 = vld [vmem:[%s987_s3 + $0x70] sm:$0xff]  ;;  %v375_v54 = vld [vmem:[%s987_s3 + $0x78] sm:$0xff]  ;;  %v710_v57 = vpack.c.bf16 %v373_v50, %v372_v49  ;;  %v712_v61 = vpack.c.bf16 %v391_v52, %v390_v51 }
  0x11   : > { %s883_s8 = scalar_lea.vmem %s986_s2, %s636_s13  ;;  %v321_v25 = vld [vmem:[%s873_s28 + $0x8] sm:$0xff]  ;;  %v320_v55 = vld [vmem:[%s873_s28] sm:$0xff]  ;;  %v323_v60 = vld [vmem:[%s873_s28 + $0x18] sm:$0xff]  ;;  %v714_v6 = vpack.c.bf16 %v375_v54, %v374_v53 }
  0x12   : > { %v329_v26 = vld [vmem:[%s878_s5 + $0x8] sm:$0xff]  ;;  %695 = vmatpush3.bf16.msra.mxu0 %v694_v19  ;;  %726 = vmatpush3.bf16.msra.mxu1 %v694_v19  ;;  %v328_v56 = vld [vmem:[%s878_s5] sm:$0xff]  ;;  %v331_v62 = vld [vmem:[%s878_s5 + $0x18] sm:$0xff] }
  0x13   : > { %v345_v27 = vld [vmem:[%s883_s8 + $0x8] sm:$0xff]  ;;  %v337_v30 = vadd.f32 %v329_v26, %v321_v25  ;;  %697 = vmatprep.subr.bf16.mxu0 %v696_v20  ;;  %719 = vmatprep.subr.bf16.mxu1 %v696_v20  ;;  %v324_v58 = vld [vmem:[%s873_s28 + $0x20] sm:$0xff]  ;;  %v327_v63 = vld [vmem:[%s873_s28 + $0x38] sm:$0xff]  ;;  %v336_v1 = vadd.f32 %v328_v56, %v320_v55  ;;  %v339_v7 = vadd.f32 %v331_v62, %v323_v60 }
  0x14   : > { %v325_v28 = vld [vmem:[%s873_s28 + $0x28] sm:$0xff]  ;;  %v332_v59 = vld [vmem:[%s878_s5 + $0x20] sm:$0xff]  ;;  %v335_v0 = vld [vmem:[%s878_s5 + $0x38] sm:$0xff] }
  0x15   : > { %v333_v31 = vld [vmem:[%s878_s5 + $0x28] sm:$0xff]  ;;  %v353_v39 = vadd.f32 %v345_v27, %v337_v30  ;;  %v344_v2 = vld [vmem:[%s883_s8] sm:$0xff]  ;;  %v340_v3 = vadd.f32 %v332_v59, %v324_v58  ;;  %v322_v5 = vld [vmem:[%s873_s28 + $0x10] sm:$0xff]  ;;  %v343_v8 = vadd.f32 %v335_v0, %v327_v63 }
  0x16   : > { %v349_v32 = vld [vmem:[%s883_s8 + $0x28] sm:$0xff]  ;;  %v341_v36 = vadd.f32 %v333_v31, %v325_v28  ;;  %699 = vmatpush3.bf16.msra.mxu0 %v698_v29  ;;  %727 = vmatpush3.bf16.msra.mxu1 %v698_v29  ;;  %v348_v4 = vld [vmem:[%s883_s8 + $0x20] sm:$0xff]  ;;  %v330_v9 = vld [vmem:[%s878_s5 + $0x10] sm:$0xff]  ;;  %v352_v14 = vadd.f32 %v344_v2, %v336_v1 }
  0x17   : > { %701 = vmatprep.subr.bf16.mxu0 %v700_v33  ;;  %720 = vmatprep.subr.bf16.mxu1 %v700_v33  ;;  %v326_v10 = vld [vmem:[%s873_s28 + $0x30] sm:$0xff]  ;;  %v347_v12 = vld [vmem:[%s883_s8 + $0x18] sm:$0xff]  ;;  %v356_v15 = vadd.f32 %v348_v4, %v340_v3  ;;  %v338_v16 = vadd.f32 %v330_v9, %v322_v5  ;;  %s639_s28 = sshll.u32 %s994_s15, 5 }
  0x18   : > { %v357_v40 = vadd.f32 %v349_v32, %v341_v36  ;;  %456 = vmatprep.mubr.f32.mxu0 %v353_v39  ;;  %v334_v11 = vld [vmem:[%s878_s5 + $0x30] sm:$0xff]  ;;  %v351_v13 = vld [vmem:[%s883_s8 + $0x38] sm:$0xff]  ;;  %v355_v18 = vadd.f32 %v347_v12, %v339_v7  ;;  %s319_s7 = scalar_lea.vmem %s988_s4, %s639_s28 }
  0x19   : > { %v342_v17 = vadd.f32 %v334_v11, %v326_v10  ;;  %v359_v19 = vadd.f32 %v351_v13, %v343_v8  ;;  %v346_v20 = vld [vmem:[%s883_s8 + $0x10] sm:$0xff]  ;;  %482 = vst.msk [vmem:[%s319_s7] sm:$0xff] %vm481_vm0, %v781_v24  ;;  %483 = vst.msk [vmem:[%s319_s7 + $0x8] sm:$0xff] %vm481_vm0, %v781_v24 }
  0x1a   : > { %466 = vmatprep.mubr.f32.mxu1 %v357_v40  ;;  %703 = vmatpush3.bf16.msra.mxu0 %v702_v41  ;;  %v350_v21 = vld [vmem:[%s883_s8 + $0x30] sm:$0xff]  ;;  %v354_v22 = vadd.f32 %v346_v20, %v338_v16  ;;  %484 = vst.msk [vmem:[%s319_s7 + $0x10] sm:$0xff] %vm481_vm0, %v781_v24  ;;  %485 = vst.msk [vmem:[%s319_s7 + $0x18] sm:$0xff] %vm481_vm0, %v781_v24 }
  0x1b   : > { %728 = vmatpush3.bf16.msra.mxu1 %v702_v41  ;;  %705 = vmatprep.subr.bf16.mxu0 %v704_v42  ;;  %v358_v23 = vadd.f32 %v350_v21, %v342_v17 }
  0x1c   : > { %721 = vmatprep.subr.bf16.mxu1 %v704_v42 }
  0x1e   : > { %707 = vmatpush3.bf16.msra.mxu0 %v706_v47 }
  0x1f   : > { %729 = vmatpush3.bf16.msra.mxu1 %v706_v47  ;;  %709 = vmatprep.subr.bf16.mxu0 %v708_v48 }
  0x20   : > { %722 = vmatprep.subr.bf16.mxu1 %v708_v48  ;;  %v486_v28 = vld [vmem:[%s319_s7] sm:$0xff]  ;;  %v487_v38 = vld [vmem:[%s319_s7 + $0x8] sm:$0xff] }
  0x21   : > { %v488_v30 = vld [vmem:[%s319_s7 + $0x10] sm:$0xff]  ;;  %v489_v40 = vld [vmem:[%s319_s7 + $0x18] sm:$0xff] }
  0x22   : > { %711 = vmatpush3.bf16.msra.mxu0 %v710_v57 }
  0x23   : > { %730 = vmatpush3.bf16.msra.mxu1 %v710_v57  ;;  %713 = vmatprep.subr.bf16.mxu0 %v712_v61 }
  0x24   : > { %723 = vmatprep.subr.bf16.mxu1 %v712_v61 }
  0x26   : > { %715 = vmatpush3.bf16.msra.mxu0 %v714_v6 }
  0x27   : > { %731 = vmatpush3.bf16.msra.mxu1 %v714_v6 }
  0x29   : > { %457 = vmatmul.mubr.f32.vlgmr.msra.gmra.mrb[0].mxu0 %v352_v14 }
  0x2a   : > { %467 = vmatmul.mubr.f32.vlgmr.msra.gmra.mrb[0].mxu1 %v356_v15  ;;  %461 = vmatprep.mubr.f32.mxu0 %v355_v18 }
  0x2b   : > { %471 = vmatprep.mubr.f32.mxu1 %v359_v19 }
  0x2d   : > { %462 = vmatmul.mubr.f32.gmra.mrb[2].mxu0 %v354_v22 }
  0x2e   : > { %472 = vmatmul.mubr.f32.gmra.mrb[2].mxu1 %v358_v23 }
  0xfc   : > { %v672_v25 = vpop.f32.mrb[0].mxu0 }
  0xfd   : > { %v678_v26 = vpop.f32.mrb[0].mxu1  ;;  %v673_v27 = vpop.f32.mrb[1].mxu0 }
  0xfe   : > { %v679_v29 = vpop.f32.mrb[1].mxu1  ;;  %v674_v31 = vadd.f32 %v673_v27, %v672_v25 }
  0xff   : > { %v680_v32 = vadd.f32 %v679_v29, %v678_v26 }
 0x100   : > { %v490_v33 = vadd.f32 %v674_v31, %v486_v28  ;;  %v675_v35 = vpop.f32.mrb[2].mxu0 }
 0x101   : > { %v492_v34 = vadd.f32 %v680_v32, %v488_v30  ;;  %v681_v36 = vpop.f32.mrb[2].mxu1  ;;  %v676_v37 = vpop.f32.mrb[3].mxu0 }
 0x102   : > { %v682_v39 = vpop.f32.mrb[3].mxu1  ;;  %495 = vst.msk [vmem:[%s319_s7] sm:$0xff] %vm481_vm0, %v490_v33  ;;  %v677_v41 = vadd.f32 %v676_v37, %v675_v35 }
 0x103   : > { %497 = vst.msk [vmem:[%s319_s7 + $0x10] sm:$0xff] %vm481_vm0, %v492_v34  ;;  %v683_v42 = vadd.f32 %v682_v39, %v681_v36 }
 0x104   : > { %v491_v43 = vadd.f32 %v677_v41, %v487_v38 }
 0x105   : > { %v493_v44 = vadd.f32 %v683_v42, %v489_v40 }
 0x106   : > { %496 = vst.msk [vmem:[%s319_s7 + $0x8] sm:$0xff] %vm481_vm0, %v491_v43 }
 0x107   : > { %498 = vst.msk [vmem:[%s319_s7 + $0x18] sm:$0xff] %vm481_vm0, %v493_v44 }
 0x108 PF: > { %s14_s17 = sadd.s32 1, %s779_s17   ;;  %s989_s15 = smov %s775_s16 }
 0x109   : > { %p11_p5 = scmp.ge.s32.totalorder %s14_s17, 4   ;;  %s990_s16 = smov %s992_s18 }
 0x10b   :  { %13 = sbr.rel (!%p11_p5) target bundleno = 2 (0x2), region = 79 }

// kernel: feature_multiscale_forward.5
= control target key start
LH: loop header
LB: loop body
LE: loop exit
PB: predicated region body
PF: predicated region fallthrough
CT: control target
= control target key end

     0   :  { %s552_s12 = smov 0   ;;  %s554_s13 = smov 0   ;;  %s596_s0 = inlined_call_operand.vmem [shape: f32[2,32,256], index: 0, kind: input, shape index: {}]   ;;  %s597_s1 = inlined_call_operand.vmem [shape: f32[2,32,256], index: 1, kind: input, shape index: {}]   ;;  %s598_s2 = inlined_call_operand.vmem [shape: f32[2,2,32], index: 2, kind: input, shape index: {}]   ;;  %s599_s3 = inlined_call_operand.vmem [shape: f32[2,32,256], index: 3, kind: output, shape index: {}]  }
   0x1   :  { %s556_s14 = smov 0  }
   0x2 LB: > { %s25_s15 = sadd.s32 1, %s526_s13  ;;  %p471_p0 = scmp.ge.s32.totalorder %s530_s14, 1  ;;  %s530_s14 = sphi %s556_s14, %s13_s14   ;;  %s526_s13 = sphi %s554_s13, %s601_s13   ;;  %s522_s12 = sphi %s552_s12, %s600_s12  }
   0x3   : > { %p27_p1 = scmp.ge.s32.totalorder %s25_s15, 2  ;;  %p184_p2 = scmp.lt.s32.totalorder %s530_s14, 3 }
   0x5   : > { %s603_s15 = smov (%p27_p1, %s25_s15), 0  ;;  %p185_p3 = pnand %p471_p0, %p184_p2 }
   0x6   : > { %p230_p4 = scmp.lt.s32.totalorder (!%p185_p3), %s522_s12, 1  ;;  %v264_v0 = vlaneseq (!%p185_p3) }
   0x7   : > { %188 = sbr.rel (%p185_p3) target bundleno = 153 (0x99), region = 32 }
   0x8   : > { %v265_v1 = vshrl.u32 (!%p185_p3), %v264_v0, 7 }
   0xa   : > { %v266_v2 = vsub.s32 (!%p185_p3), 0, %v265_v1  ;;  %v285_v5 = vsub.s32 (!%p185_p3), 1, %v265_v1 }
   0xe   : > { %s605_s12 = smov (!%p230_p4, %s522_s12), 1 }
   0xf   : > { %s476_s16 = sshll.u32 %s605_s12, 1  ;;  %s573_s20 = sshll.u32 %s605_s12, 6 }
  0x10   : > { %s252_s19 = scalar_lea.vmem %s598_s2, %s476_s16  ;;  %s237_s23 = scalar_lea.vmem %s596_s0, %s573_s20 }
  0x11   : > { %v263_v3 = vld [vmem:[%s252_s19] sm:$0x3]  ;;  %s247_s26 = scalar_lea.vmem %s597_s1, %s573_s20  ;;  %v303_v10 = vld [vmem:[%s237_s23 + $0x8] sm:$0xff]  ;;  %v304_v13 = vld [vmem:[%s237_s23 + $0x10] sm:$0xff]  ;;  %s261_s29 = scalar_lea.vmem %s599_s3, %s573_s20 }
  0x12   : > { %v267_v4 = vrot.slane %v263_v3, %v266_v2  ;;  %v286_v6 = vrot.slane %v263_v3, %v285_v5  ;;  %v302_v9 = vld [vmem:[%s237_s23] sm:$0xff]  ;;  %v305_v14 = vld [vmem:[%s237_s23 + $0x18] sm:$0xff]  ;;  %v320_v15 = vld [vmem:[%s247_s26 + $0x10] sm:$0xff] }
  0x13   : > { %v321_v16 = vld [vmem:[%s247_s26 + $0x18] sm:$0xff]  ;;  %v318_v17 = vld [vmem:[%s247_s26] sm:$0xff]  ;;  %v319_v18 = vld [vmem:[%s247_s26 + $0x8] sm:$0xff] }
  0x14   : > { %277 = vbcast.lane.b32.xlu1 %v267_v4, 272  ;;  %269 = vbcast.lane.b32.xlu0 %v267_v4, 256  ;;  %v306_v19 = vld [vmem:[%s237_s23 + $0x20] sm:$0xff]  ;;  %v307_v20 = vld [vmem:[%s237_s23 + $0x28] sm:$0xff]  ;;  %v308_v27 = vld [vmem:[%s237_s23 + $0x30] sm:$0xff] }
  0x15   : > { %v309_v28 = vld [vmem:[%s237_s23 + $0x38] sm:$0xff]  ;;  %v324_v33 = vld [vmem:[%s247_s26 + $0x30] sm:$0xff]  ;;  %v322_v35 = vld [vmem:[%s247_s26 + $0x20] sm:$0xff] }
  0x16   : > { %v325_v34 = vld [vmem:[%s247_s26 + $0x38] sm:$0xff]  ;;  %v323_v36 = vld [vmem:[%s247_s26 + $0x28] sm:$0xff] }
  0x18   : > { %281 = vbcast.lane.b32.xlu1 %v267_v4, 280  ;;  %273 = vbcast.lane.b32.xlu0 %v267_v4, 264 }
  0x1c   : > { %292 = vbcast.lane.b32.xlu1 %v286_v6, 264  ;;  %288 = vbcast.lane.b32.xlu0 %v286_v6, 256 }
  0x20   : > { %300 = vbcast.lane.b32.xlu1 %v286_v6, 280  ;;  %296 = vbcast.lane.b32.xlu0 %v286_v6, 272 }
  0x86   : > { %v278_v7 = vpop.permute.xlu1 %277  ;;  %v270_v8 = vpop.permute.xlu0 %269 }
  0x87   : > { %v310_v21 = vmul.f32 %v302_v9, %v270_v8  ;;  %v311_v22 = vmul.f32 %v303_v10, %v270_v8  ;;  %v314_v41 = vmul.f32 %v306_v19, %v278_v7  ;;  %v315_v42 = vmul.f32 %v307_v20, %v278_v7 }
  0x8a   : > { %v282_v11 = vpop.permute.xlu1 %281  ;;  %v274_v12 = vpop.permute.xlu0 %273 }
  0x8b   : > { %v312_v23 = vmul.f32 %v304_v13, %v274_v12  ;;  %v313_v24 = vmul.f32 %v305_v14, %v274_v12  ;;  %v316_v43 = vmul.f32 %v308_v27, %v282_v11  ;;  %v317_v44 = vmul.f32 %v309_v28, %v282_v11 }
  0x8e   : > { %v293_v25 = vpop.permute.xlu1 %292  ;;  %v289_v26 = vpop.permute.xlu0 %288 }
  0x8f   : > { %v328_v29 = vmul.f32 %v320_v15, %v293_v25  ;;  %v329_v30 = vmul.f32 %v321_v16, %v293_v25  ;;  %v326_v31 = vmul.f32 %v318_v17, %v289_v26  ;;  %v327_v32 = vmul.f32 %v319_v18, %v289_v26 }
  0x91   : > { %v336_v37 = vadd.f32 %v328_v29, %v312_v23  ;;  %v337_v38 = vadd.f32 %v329_v30, %v313_v24  ;;  %v334_v39 = vadd.f32 %v326_v31, %v310_v21  ;;  %v335_v40 = vadd.f32 %v327_v32, %v311_v22 }
  0x92   : > { %v301_v45 = vpop.permute.xlu1 %300  ;;  %v297_v46 = vpop.permute.xlu0 %296 }
  0x93   : > { %344 = vst [vmem:[%s261_s29 + $0x10] sm:$0xff] %v336_v37  ;;  %345 = vst [vmem:[%s261_s29 + $0x18] sm:$0xff] %v337_v38  ;;  %v332_v47 = vmul.f32 %v324_v33, %v301_v45  ;;  %v333_v48 = vmul.f32 %v325_v34, %v301_v45  ;;  %v330_v49 = vmul.f32 %v322_v35, %v297_v46 }
  0x94   : > { %342 = vst [vmem:[%s261_s29] sm:$0xff] %v334_v39  ;;  %343 = vst [vmem:[%s261_s29 + $0x8] sm:$0xff] %v335_v40  ;;  %v331_v50 = vmul.f32 %v323_v36, %v297_v46 }
  0x95   : > { %v340_v51 = vadd.f32 %v332_v47, %v316_v43  ;;  %v341_v52 = vadd.f32 %v333_v48, %v317_v44  ;;  %v338_v53 = vadd.f32 %v330_v49, %v314_v41 }
  0x96   : > { %v339_v54 = vadd.f32 %v331_v50, %v315_v42 }
  0x97   : > { %348 = vst [vmem:[%s261_s29 + $0x30] sm:$0xff] %v340_v51  ;;  %349 = vst [vmem:[%s261_s29 + $0x38] sm:$0xff] %v341_v52 }
  0x98   : > { %346 = vst [vmem:[%s261_s29 + $0x20] sm:$0xff] %v338_v53  ;;  %347 = vst [vmem:[%s261_s29 + $0x28] sm:$0xff] %v339_v54 }
  0x99 PF: > { %s13_s14 = sadd.s32 1, %s530_s14   ;;  %s600_s12 = smov %s526_s13 }
  0x9a   : > { %p10_p5 = scmp.ge.s32.totalorder %s13_s14, 4   ;;  %s601_s13 = smov %s603_s15 }
  0x9c   :  { %12 = sbr.rel (!%p10_p5) target bundleno = 2 (0x2), region = 68 }

// kernel: feature_multiscale_forward.4
= control target key start
LH: loop header
LB: loop body
LE: loop exit
PB: predicated region body
PF: predicated region fallthrough
CT: control target
= control target key end

     0   :  { %v760_v3 = vmov 0.0|0.0   ;;  %vm761_vm0 = vmmov 0   ;;  %v762_v8 = vmov 0.0   ;;  %v763_v14 = vmov 1983009808   ;;  %s764_s29 = smov 96   ;;  %s1036_s1 = inlined_call_operand.vmem [shape: f32[288,128], index: 1, kind: input, shape index: {}]   ;;  %s1037_s0 = inlined_call_operand.vmem [shape: f32[2,288], index: 0, kind: input, shape index: {}]   ;;  %s1038_s3 = inlined_call_operand.vmem [shape: f32[128,64], index: 3, kind: input, shape index: {}]   ;;  %s1039_s5 = inlined_call_operand.vmem [shape: f32[64,96], index: 5, kind: input, shape index: {}]   ;;  %s1040_s2 = inlined_call_operand.vmem [shape: f32[1,128], index: 2, kind: input, shape index: {}]   ;;  %s1041_s4 = inlined_call_operand.vmem [shape: f32[1,64], index: 4, kind: input, shape index: {}]   ;;  %s1042_s6 = inlined_call_operand.vmem [shape: f32[1,96], index: 6, kind: input, shape index: {}]   ;;  %s1043_s7 = inlined_call_operand.vmem [shape: f32[2,2,32], index: 7, kind: output, shape index: {}]  }
   0x1   :  { %v44_v0 = vld [vmem:[%s1036_s1 + $0x80] sm:$0xff]  ;;  %v45_v1 = vld [vmem:[%s1036_s1 + $0x88] sm:$0xff]  ;;  %702 = vmatprep.subr.bf16.mxu1 %v760_v3  ;;  %v46_v6 = vld [vmem:[%s1036_s1 + $0x90] sm:$0xff]  ;;  %613 = vmatprep.mubr.msk.f32.mxu1 %vm761_vm0, %v762_v8  ;;  %v74_v15 = vunpack.c.l.s4 %v763_v14  ;;  %v76_v16 = vlaneseq  ;;  %vm90_vm1 = vcmask 261120   ;;  %vm341_vm2 = vcmask 523264  }
   0x2   :  { %v28_v2 = vld [vmem:[%s1036_s1] sm:$0xff]  ;;  %v670_v4 = vpack.c.bf16 %v45_v1, %v44_v0  ;;  %v29_v5 = vld [vmem:[%s1036_s1 + $0x8] sm:$0xff]  ;;  %v47_v7 = vld [vmem:[%s1036_s1 + $0x98] sm:$0xff]  ;;  %vm524_vm3 = vcmask 1040384   ;;  %vm527_vm4 = vcmask 254976  }
   0x3   :  { %v672_v9 = vpack.c.bf16 %v29_v5, %v28_v2  ;;  %v674_v10 = vpack.c.bf16 %v47_v7, %v46_v6  ;;  %v30_v11 = vld [vmem:[%s1036_s1 + $0x10] sm:$0xff]  ;;  %v31_v12 = vld [vmem:[%s1036_s1 + $0x18] sm:$0xff]  ;;  %v48_v13 = vld [vmem:[%s1036_s1 + $0xa0] sm:$0xff]  ;;  %v75_v24 = vunpack.c.0.s8 %v74_v15  ;;  %v853_v25 = vshrl.u32 %v76_v16, 7 }
   0x4   :  { %671 = vmatprep.subr.bf16.mxu0 %v670_v4  ;;  %v49_v17 = vld [vmem:[%s1036_s1 + $0xa8] sm:$0xff]  ;;  %v676_v18 = vpack.c.bf16 %v31_v12, %v30_v11  ;;  %v32_v20 = vld [vmem:[%s1036_s1 + $0x20] sm:$0xff]  ;;  %v50_v22 = vld [vmem:[%s1036_s1 + $0xb0] sm:$0xff] }
   0x5   :  { %673 = vmatpush3.bf16.msra.mxu0 %v672_v9  ;;  %v678_v19 = vpack.c.bf16 %v49_v17, %v48_v13  ;;  %v33_v21 = vld [vmem:[%s1036_s1 + $0x28] sm:$0xff]  ;;  %v51_v23 = vld [vmem:[%s1036_s1 + $0xb8] sm:$0xff]  ;;  %v34_v28 = vld [vmem:[%s1036_s1 + $0x30] sm:$0xff]  ;;  %v78_v33 = vsub.s32 %v75_v24, %v853_v25 }
   0x6   :  { %675 = vmatprep.subr.bf16.mxu0 %v674_v10  ;;  %v680_v26 = vpack.c.bf16 %v33_v21, %v32_v20  ;;  %v682_v27 = vpack.c.bf16 %v51_v23, %v50_v22  ;;  %v35_v29 = vld [vmem:[%s1036_s1 + $0x38] sm:$0xff]  ;;  %v52_v30 = vld [vmem:[%s1036_s1 + $0xc0] sm:$0xff]  ;;  %v53_v31 = vld [vmem:[%s1036_s1 + $0xc8] sm:$0xff] }
   0x7   :  { %v60_v32 = vld [vmem:[%s1036_s1 + $0x100] sm:$0xff]  ;;  %v61_v34 = vld [vmem:[%s1036_s1 + $0x108] sm:$0xff]  ;;  %v62_v36 = vld [vmem:[%s1036_s1 + $0x110] sm:$0xff]  ;;  %v684_v37 = vpack.c.bf16 %v35_v29, %v34_v28  ;;  %v686_v41 = vpack.c.bf16 %v53_v31, %v52_v30 }
   0x8   :  { %v26_v35 = vld [vmem:[%s1037_s0] sm:$0x3f]  ;;  %v703_v38 = vpack.c.bf16 %v61_v34, %v60_v32  ;;  %v63_v40 = vld [vmem:[%s1036_s1 + $0x118] sm:$0xff]  ;;  %v37_v43 = vld [vmem:[%s1036_s1 + $0x48] sm:$0xff] }
   0x9   :  { %677 = vmatpush3.bf16.msra.mxu0 %v676_v18  ;;  %v27_v39 = vmul.f32 0.00390625, %v26_v35  ;;  %v36_v42 = vld [vmem:[%s1036_s1 + $0x40] sm:$0xff]  ;;  %v54_v44 = vld [vmem:[%s1036_s1 + $0xd0] sm:$0xff]  ;;  %v55_v45 = vld [vmem:[%s1036_s1 + $0xd8] sm:$0xff]  ;;  %v706_v48 = vpack.c.bf16 %v63_v40, %v62_v36 }
   0xa   :  { %679 = vmatprep.subr.bf16.mxu0 %v678_v19  ;;  %704 = vmatpush3.bf16.msra.mxu1 %v703_v38  ;;  %v233_v49 = vld [vmem:[%s1038_s3] sm:$0xff]  ;;  %v234_v50 = vld [vmem:[%s1038_s3 + $0x8] sm:$0xff]  ;;  %v688_v51 = vpack.c.bf16 %v37_v43, %v36_v42  ;;  %v690_v53 = vpack.c.bf16 %v55_v45, %v54_v44  ;;  %v38_v54 = vld [vmem:[%s1036_s1 + $0x50] sm:$0xff] }
   0xb   :  { %v72_v46 = vcombine.high %v27_v39, %v27_v39  ;;  %v79_v47 = vrot.slane %v27_v39, %v78_v33  ;;  %705 = vmatprep.subr.bf16.mxu1 %v760_v3  ;;  %v39_v55 = vld [vmem:[%s1036_s1 + $0x58] sm:$0xff]  ;;  %v56_v57 = vld [vmem:[%s1036_s1 + $0xe0] sm:$0xff]  ;;  %v57_v58 = vld [vmem:[%s1036_s1 + $0xe8] sm:$0xff]  ;;  %v709_v59 = vpack.c.bf16 %v234_v50, %v233_v49 }
   0xc   :  { %v235_v60 = vld [vmem:[%s1038_s3 + $0x10] sm:$0xff]  ;;  %v236_v61 = vld [vmem:[%s1038_s3 + $0x18] sm:$0xff]  ;;  %v692_v62 = vpack.c.bf16 %v39_v55, %v38_v54  ;;  %v694_v63 = vpack.c.bf16 %v57_v58, %v56_v57  ;;  %v40_v0 = vld [vmem:[%s1036_s1 + $0x60] sm:$0xff] }
   0xd   :  { %681 = vmatpush3.bf16.msra.mxu0 %v680_v26  ;;  %v87_v52 = vcombine.high %v79_v47, %v79_v47  ;;  %v86_v56 = vrot.slane %v72_v46, %v78_v33  ;;  %v41_v1 = vld [vmem:[%s1036_s1 + $0x68] sm:$0xff]  ;;  %v58_v2 = vld [vmem:[%s1036_s1 + $0xf0] sm:$0xff]  ;;  %v59_v4 = vld [vmem:[%s1036_s1 + $0xf8] sm:$0xff]  ;;  %v712_v5 = vpack.c.bf16 %v236_v61, %v235_v60 }
   0xe   :  { %683 = vmatprep.subr.bf16.mxu0 %v682_v27  ;;  %707 = vmatpush3.bf16.msra.mxu1 %v706_v48  ;;  %v237_v6 = vld [vmem:[%s1038_s3 + $0x20] sm:$0xff]  ;;  %v238_v7 = vld [vmem:[%s1038_s3 + $0x28] sm:$0xff]  ;;  %v696_v9 = vpack.c.bf16 %v41_v1, %v40_v0  ;;  %v698_v10 = vpack.c.bf16 %v59_v4, %v58_v2  ;;  %v42_v11 = vld [vmem:[%s1036_s1 + $0x70] sm:$0xff] }
   0xf   :  { %157 = vmatprep.mubr.f32.mxu0 %v87_v52  ;;  %708 = vmatprep.subr.bf16.mxu1 %v760_v3  ;;  %v43_v12 = vld [vmem:[%s1036_s1 + $0x78] sm:$0xff]  ;;  %v715_v13 = vpack.c.bf16 %v238_v7, %v237_v6  ;;  %v239_v14 = vld [vmem:[%s1038_s3 + $0x30] sm:$0xff]  ;;  %v241_v18 = vld [vmem:[%s1038_s3 + $0x40] sm:$0xff] }
  0x10   :  { %v240_v15 = vld [vmem:[%s1038_s3 + $0x38] sm:$0xff]  ;;  %v700_v16 = vpack.c.bf16 %v43_v12, %v42_v11  ;;  %v242_v19 = vld [vmem:[%s1038_s3 + $0x48] sm:$0xff]  ;;  %v243_v21 = vld [vmem:[%s1038_s3 + $0x50] sm:$0xff] }
  0x11   :  { %685 = vmatpush3.bf16.msra.mxu0 %v684_v37  ;;  %614 = vmatmul.mubr.msk.f32.vlgmr.msra.gmra.mrb[0].mxu1 %vm90_vm1, %v86_v56  ;;  %v718_v17 = vpack.c.bf16 %v240_v15, %v239_v14  ;;  %v721_v20 = vpack.c.bf16 %v242_v19, %v241_v18  ;;  %v244_v22 = vld [vmem:[%s1038_s3 + $0x58] sm:$0xff]  ;;  %v245_v24 = vld [vmem:[%s1038_s3 + $0x60] sm:$0xff]  ;;  %v246_v26 = vld [vmem:[%s1038_s3 + $0x68] sm:$0xff] }
  0x12   :  { %687 = vmatprep.subr.bf16.mxu0 %v686_v41  ;;  %710 = vmatpush3.bf16.msra.mxu1 %v709_v59  ;;  %v724_v23 = vpack.c.bf16 %v244_v22, %v243_v21  ;;  %v727_v27 = vpack.c.bf16 %v246_v26, %v245_v24  ;;  %v248_v28 = vld [vmem:[%s1038_s3 + $0x78] sm:$0xff]  ;;  %v326_v30 = vld [vmem:[%s1039_s5] sm:$0xff]  ;;  %v327_v31 = vld [vmem:[%s1039_s5 + $0x8] sm:$0xff]  ;;  %v512_v26 = vsub.s32 0, %v853_v25 }
  0x13   :  { %648 = vmatprep.mubr.msk.f32.mxu1 %vm761_vm0, %v762_v8  ;;  %711 = vmatprep.subr.bf16.mxu1 %v760_v3  ;;  %v328_v32 = vld [vmem:[%s1039_s5 + $0x10] sm:$0xff]  ;;  %v733_v33 = vpack.c.bf16 %v327_v31, %v326_v30  ;;  %v329_v34 = vld [vmem:[%s1039_s5 + $0x18] sm:$0xff]  ;;  %v330_v36 = vld [vmem:[%s1039_s5 + $0x20] sm:$0xff] }
  0x14   :  { %v736_v35 = vpack.c.bf16 %v329_v34, %v328_v32  ;;  %v331_v37 = vld [vmem:[%s1039_s5 + $0x28] sm:$0xff]  ;;  %v534_v43 = vld [vmem:[%s1040_s2] ss:$0 sm:$0xff] }
  0x15   :  { %689 = vmatpush3.bf16.msra.mxu0 %v688_v51  ;;  %v739_v38 = vpack.c.bf16 %v331_v37, %v330_v36  ;;  %v536_v49 = vld [vmem:[%s1041_s4] ss:$0 sm:$0xff]  ;;  %s766_s4 = smov 32  }
  0x16   :  { %691 = vmatprep.subr.bf16.mxu0 %v690_v53  ;;  %713 = vmatpush3.bf16.msra.mxu1 %v712_v5  ;;  %v537_v53 = vld [vmem:[%s1042_s6] ss:$0 sm:$0xff] }
  0x17   :  { %714 = vmatprep.subr.bf16.mxu1 %v760_v3 }
  0x19   :  { %693 = vmatpush3.bf16.msra.mxu0 %v692_v62 }
  0x1a   :  { %695 = vmatprep.subr.bf16.mxu0 %v694_v63  ;;  %716 = vmatpush3.bf16.msra.mxu1 %v715_v13 }
  0x1b   :  { %717 = vmatprep.subr.bf16.mxu1 %v760_v3 }
  0x1d   :  { %697 = vmatpush3.bf16.msra.mxu0 %v696_v9 }
  0x1e   :  { %699 = vmatprep.subr.bf16.mxu0 %v698_v10  ;;  %719 = vmatpush3.bf16.msra.mxu1 %v718_v17 }
  0x1f   :  { %720 = vmatprep.subr.bf16.mxu1 %v760_v3 }
  0x21   :  { %701 = vmatpush3.bf16.msra.mxu0 %v700_v16  ;;  %v767_v16 = vmov 1966171168  }
  0x22   :  { %732 = vmatprep.subr.bf16.mxu0 %v760_v3  ;;  %722 = vmatpush3.bf16.msra.mxu1 %v721_v20  ;;  %v464_v17 = vunpack.c.l.s4 %v767_v16 }
  0x23   :  { %723 = vmatprep.subr.bf16.mxu1 %v760_v3 }
  0x24   :  { %158 = vmatmul.mubr.f32.vlgmr.msra.gmra.mrb[0].mxu0 %v79_v47  ;;  %v332_v47 = vld [vmem:[%s1039_s5 + $0x30] sm:$0xff]  ;;  %v465_v19 = vunpack.c.0.s8 %v464_v17 }
  0x25   :  { %667 = vmatprep.mubr.msk.f32.mxu0 %vm761_vm0, %v762_v8  ;;  %v247_v8 = vld [vmem:[%s1038_s3 + $0x70] sm:$0xff]  ;;  %734 = vmatpush3.bf16.msra.mxu0 %v733_v33 }
  0x26   :  { %725 = vmatpush3.bf16.msra.mxu1 %v724_v23  ;;  %v730_v29 = vpack.c.bf16 %v248_v28, %v247_v8  ;;  %735 = vmatprep.subr.bf16.mxu0 %v760_v3  ;;  %v468_v22 = vsub.s32 %v465_v19, %v853_v25 }
  0x27   :  { %726 = vmatprep.subr.bf16.mxu1 %v760_v3 }
  0x29   :  { %737 = vmatpush3.bf16.msra.mxu0 %v736_v35 }
  0x2a   :  { %728 = vmatpush3.bf16.msra.mxu1 %v727_v27  ;;  %738 = vmatprep.subr.bf16.mxu0 %v760_v3 }
  0x2b   :  { %729 = vmatprep.subr.bf16.mxu1 %v760_v3 }
  0x2d   :  { %740 = vmatpush3.bf16.msra.mxu0 %v739_v38 }
  0x2e   :  { %731 = vmatpush3.bf16.msra.mxu1 %v730_v29  ;;  %741 = vmatprep.subr.bf16.mxu0 %v760_v3  ;;  %v333_v3 = vld [vmem:[%s1039_s5 + $0x38] sm:$0xff]  ;;  %s765_s5 = smov 64  }
  0x2f   :  { %v742_v48 = vpack.c.bf16 %v333_v3, %v332_v47 }
  0x31   :  { %743 = vmatpush3.bf16.msra.mxu0 %v742_v48 }
  0xe4   :  { %v229_v39 = vpop.f32.mrb[0].mxu1 }
  0xe5   :  { %v615_v40 = vpop.f32.mrb[1].mxu1 }
  0xf7   :  { %v571_v41 = vpop.f32.mrb[0].mxu0 }
  0xf8   :  { %v572_v42 = vpop.f32.mrb[1].mxu0 }
  0xf9   :  { %v573_v44 = vadd.f32 %v572_v42, %v571_v41 }
  0xfb   :  { %v160_v45 = vadd.f32 %v573_v44, %v534_v43 }
  0xfd   :  { %v230_v46 = vadd.f32 %v229_v39, %v160_v45 }
  0xff   :  { %649 = vmatmul.mubr.f32.vlgmr.msra.gmra.mrb[2].mxu1 %v230_v46 }
 0x1d2   :  { %v322_v50 = vpop.f32.mrb[2].mxu1 }
 0x1d3   :  { %v323_v51 = vadd.f32 %v536_v49, %v322_v50  ;;  %v650_v52 = vpop.f32.mrb[3].mxu1 }
 0x1d5   :  { %668 = vmatmul.mubr.msk.f32.vlgmr.msra.gmra.mrb[2].mxu0 %vm341_vm2, %v323_v51 }
 0x2a8   :  { %v411_v54 = vpop.f32.mrb[2].mxu0 }
 0x2a9   :  { %v412_v55 = vadd.f32 %v537_v53, %v411_v54  ;;  %v669_v56 = vpop.f32.mrb[3].mxu0 }
 0x2ab   :  { %416 = vrot.lane.b32.xlu0 %v412_v55, %s764_s29 }
 0x2af   :  { %420 = vrot.lane.b32.xlu0 %v412_v55, %s765_s5 }
 0x31d   :  { %v417_v57 = vpop.permute.xlu0 %416 }
 0x31e   :  { %v419_v58 = vmax.f32 %v412_v55, %v417_v57 }
 0x321   :  { %v421_v59 = vpop.permute.xlu0 %420 }
 0x322   :  { %v423_v60 = vmax.f32 %v419_v58, %v421_v59 }
 0x324   :  { %428 = vrot.lane.b32.xlu1 %v423_v60, %s766_s4  ;;  %v424_v6 = vsub.f32 %v412_v55, %v423_v60 }
 0x326   :  { %v425_v7 = vmul.f32 1.442695, %v424_v6 }
 0x328   :  { %434 = vrot.lane.b32.xlu1 %v423_v60, %s765_s5 }
 0x396   :  { %v429_v61 = vpop.permute.xlu1 %428 }
 0x397   :  { %v431_v62 = vsub.f32 %v412_v55, %v429_v61 }
 0x399   :  { %v432_v63 = vmul.f32 1.442695, %v431_v62 }
 0x39a   :  { %v435_v0 = vpop.permute.xlu1 %434 }
 0x39b   :  { %752 = vpow2.f32 %v432_v63  ;;  %v437_v1 = vsub.f32 %v412_v55, %v435_v0 }
 0x39d   :  { %v438_v2 = vmul.f32 1.442695, %v437_v1 }
 0x39f   :  { %754 = vpow2.f32 %v438_v2 }
 0x3a0   :  { %756 = vpow2.f32 %v425_v7 }
 0x3a5   :  { %v753_v4 = vpop.eup %752 }
 0x3a6   :  { %441 = vrot.lane.b32.xlu0 %v753_v4, %s764_s29 }
 0x3a9   :  { %v755_v5 = vpop.eup %754 }
 0x3aa   :  { %453 = vrot.lane.b32.xlu0 %v755_v5, %s764_s29  ;;  %446 = vrot.lane.b32.xlu1 %v755_v5, %s765_s5  ;;  %v757_v10 = vpop.eup %756 }
 0x418   :  { %v442_v9 = vpop.permute.xlu0 %441 }
 0x419   :  { %v444_v11 = vadd.f32 %v757_v10, %v442_v9 }
 0x41c   :  { %v447_v12 = vpop.permute.xlu1 %446  ;;  %v454_v18 = vpop.permute.xlu0 %453 }
 0x41d   :  { %v449_v13 = vadd.f32 %v447_v12, %v444_v11  ;;  %v456_v20 = vadd.f32 %v753_v4, %v454_v18 }
 0x41f   :  { %758 = vrcp.f32 %v449_v13 }
 0x429   :  { %v759_v14 = vpop.eup %758 }
 0x42a   :  { %458 = vrot.lane.b32.xlu1 %v759_v14, %s766_s4  ;;  %v452_v15 = vmul.f32 %v759_v14, %v757_v10 }
 0x42c   :  { %v469_v31 = vrot.slane %v452_v15, %v468_v22 }
 0x42e   :  { %v470_v32 = vcombine.high %v469_v31, %v469_v31  ;;  %v477_v33 = vrot.slane %v469_v31, %v468_v22 }
 0x430   :  { %v484_v36 = vrot.slane %v470_v32, %v468_v22 }
 0x49c   :  { %v459_v21 = vpop.permute.xlu1 %458 }
 0x49d   :  { %v461_v23 = vmul.f32 %v459_v21, %v456_v20 }
 0x49f   :  { %v494_v24 = vrot.slane %v461_v23, %v468_v22 }
 0x4a1   :  { %v495_v27 = vcombine.high %v494_v24, %v494_v24  ;;  %v502_v8 = vrot.slane %v494_v24, %v468_v22 }
 0x4a3   :  { %v513_v28 = vrot.slane %v502_v8, %v512_v26  ;;  %v509_v29 = vrot.slane %v495_v27, %v468_v22 }
 0x4a5   :  { %518 = vrot.lane.b32.xlu0 %v513_v28, %s764_s29  ;;  %v517_v30 = vrot.slane %v509_v29, %v512_v26 }
 0x4a7   :  { %520 = vrot.lane.b32.xlu1 %v517_v30, %s764_s29 }
 0x517   :  { %v519_v34 = vpop.permute.xlu0 %518 }
 0x518   :  { %v525_v35 = vsel %vm524_vm3, %v477_v33, %v519_v34 }
 0x519   :  { %528 = vst.msk [vmem:[%s1043_s7] sm:$0x3] %vm527_vm4, %v525_v35  ;;  %v521_v25 = vpop.permute.xlu1 %520 }
 0x51a   :  { %v526_v37 = vsel %vm524_vm3, %v484_v36, %v521_v25 }
 0x51b   :  { %529 = vst.msk [vmem:[%s1043_s7 + $0x2] sm:$0x3] %vm527_vm4, %v526_v37 }

</bundles_post_ra>
